<compile_context>
chip_gen: v7x
topology: tpu7x:2x2x1
jax: 0.10.0
libtpu: 0.0.40
codegen_flags: <defaults>
</compile_context>

<pallas_src>
import jax
import jax.numpy as jnp
from jax.experimental import pallas as pl
from jax.experimental.pallas import tpu as pltpu

_BP = 8  # sublane-padded batch size used inside the kernel


def _lstm_fc_kernel(x_ref, wx_ref, wh_ref, b_ref, fcw_ref, fcb_ref, out_ref):
    """Fused LSTM recurrence + final Linear.

    x_ref:   (B, T, I)  raw batch-first input (no wrapper-side transpose)
    wx_ref:  (I, 4H)    fused input->gate weights, gate order [i, f, o, g]
    wh_ref:  (H, 4H)    fused hidden->gate weights, same order
    b_ref:   (1, 4H)    fused gate biases (b_ih + b_hh), same order
    fcw_ref: (H, O)     fc weight (transposed vs PyTorch)
    fcb_ref: (1, O)     fc bias
    out_ref: (B, O)
    """
    B, T, I = x_ref.shape
    H = wh_ref.shape[0]

    wh = wh_ref[...]            # (H, 4H) — resident across the unrolled loop
    b = b_ref[...]              # (1, 4H)
    x = x_ref[...]              # (B, T, I)

    # Build the time-major, 8-sublane-aligned input slab in-kernel:
    # rows t*_BP + b == x[b, t, :]; rows b >= B are zero padding.
    # One-time setup, off the serial recurrence chain.
    zpad = jnp.zeros((_BP - B, I), jnp.float32)
    blocks = []
    for t in range(T):          # T is static and tiny -> unrolled
        blocks.append(x[:, t, :])      # (B, I) static slice
        blocks.append(zpad)            # pad each time step to 8 rows
    x_slab = jnp.concatenate(blocks, axis=0)          # (T*_BP, I)

    # Hoisted input projection for all time steps: one MXU pass.
    xproj = jnp.dot(x_slab, wx_ref[...],
                    preferred_element_type=jnp.float32) + b   # (T*_BP, 4H)

    h = jnp.zeros((_BP, H), jnp.float32)
    c = jnp.zeros((_BP, H), jnp.float32)
    for t in range(T):  # fully unrolled: T static
        # Whole-vreg, 8-aligned xproj block + single lane-dense recurrent matmul.
        s = xproj[t * _BP:(t + 1) * _BP, :] + jnp.dot(
            h, wh, preferred_element_type=jnp.float32)        # (_BP, 4H)
        # Full 128-lane EUP pushes (no sub-vreg-width activation inputs).
        sig = jax.nn.sigmoid(s)                                # (_BP, 4H)
        tg = jnp.tanh(s)                                       # (_BP, 4H)
        i_g = sig[:, 0:H]
        f_g = sig[:, H:2 * H]
        o_g = sig[:, 2 * H:3 * H]
        g_g = tg[:, 3 * H:4 * H]
        c = f_g * c + i_g * g_g
        h = o_g * jnp.tanh(c)

    # Final Linear on the padded last hidden state; store only the real B rows.
    fc_out = jnp.dot(h, fcw_ref[...],
                     preferred_element_type=jnp.float32) + fcb_ref[...]  # (_BP, O)
    out_ref[...] = fc_out[:B, :].astype(out_ref.dtype)


@jax.jit
def nutrition_profiler_forward(scan_history, kparams):
    """scan_history: (B, T, I) float32 (batch_first). Returns (B, 16) float32."""
    wx, wh, b, fcw, fcb = kparams
    B, T, I = scan_history.shape
    O = fcw.shape[-1]
    vmem = pl.BlockSpec(memory_space=pltpu.MemorySpace.VMEM)
    return pl.pallas_call(
        _lstm_fc_kernel,
        out_shape=jax.ShapeDtypeStruct((B, O), jnp.float32),
        in_specs=[vmem] * 6,
        out_specs=vmem,
    )(scan_history, wx, wh, b, fcw, fcb)


def init_native_params(key, input_size=4, hidden_size=32, out_size=16):
    """Deterministic synthetic params in PyTorch-native nn.LSTM / nn.Linear shapes."""
    k = jax.random.split(key, 6)
    H, I, O = hidden_size, input_size, out_size
    scale = 1.0 / jnp.sqrt(H)
    w_ih = jax.random.uniform(k[0], (4 * H, I), jnp.float32, -scale, scale)
    w_hh = jax.random.uniform(k[1], (4 * H, H), jnp.float32, -scale, scale)
    b_ih = jax.random.uniform(k[2], (4 * H,), jnp.float32, -scale, scale)
    b_hh = jax.random.uniform(k[3], (4 * H,), jnp.float32, -scale, scale)
    fc_w = jax.random.uniform(k[4], (O, H), jnp.float32, -scale, scale)
    fc_b = jax.random.uniform(k[5], (O,), jnp.float32, -scale, scale)
    return (w_ih, w_hh, b_ih, b_hh, fc_w, fc_b)


def pack_params(native):
    """PyTorch weights -> fused kernel layout with gate order [i, f, o, g]."""
    w_ih, w_hh, b_ih, b_hh, fc_w, fc_b = native
    H = w_hh.shape[1]
    order = (0, 1, 3, 2)  # PyTorch [i, f, g, o] -> kernel [i, f, o, g]
    w_ih_g = w_ih.reshape(4, H, -1)          # (4, H, I)
    w_hh_g = w_hh.reshape(4, H, H)           # (4, H, H)
    b_g = (b_ih + b_hh).reshape(4, H)        # (4, H)
    wx_cat = jnp.concatenate([w_ih_g[k].T for k in order], axis=1)   # (I, 4H)
    wh_cat = jnp.concatenate([w_hh_g[k].T for k in order], axis=1)   # (H, 4H)
    b_cat = jnp.concatenate([b_g[k] for k in order], axis=0).reshape(1, 4 * H)
    fcw = fc_w.T                             # (H, O)
    fcb = fc_b.reshape(1, -1)                # (1, O)
    return (wx_cat, wh_cat, b_cat, fcw, fcb)


def reference_forward(scan_history, native):
    """Pure-JAX replica of nn.LSTM + nn.Linear (PyTorch gate order i, f, g, o)."""
    w_ih, w_hh, b_ih, b_hh, fc_w, fc_b = native
    B, T, _ = scan_history.shape
    H = w_hh.shape[1]
    h = jnp.zeros((B, H), jnp.float32)
    c = jnp.zeros((B, H), jnp.float32)
    for t in range(T):
        xt = scan_history[:, t, :]
        gates = xt @ w_ih.T + h @ w_hh.T + b_ih + b_hh          # (B, 4H)
        i_g = jax.nn.sigmoid(gates[:, 0:H])
        f_g = jax.nn.sigmoid(gates[:, H:2 * H])
        g_g = jnp.tanh(gates[:, 2 * H:3 * H])
        o_g = jax.nn.sigmoid(gates[:, 3 * H:4 * H])
        c = f_g * c + i_g * g_g
        h = o_g * jnp.tanh(c)
    return h @ fc_w.T + fc_b


if __name__ == "__main__":
    key = jax.random.PRNGKey(0)
    k_param, k_x = jax.random.split(key)

    B, T, I = 2, 8, 4  # batch=2, seq=8, input_size=4 (as the module implies)
    native = init_native_params(k_param, input_size=I, hidden_size=32, out_size=16)
    kparams = pack_params(native)
    scan_history = jax.random.normal(k_x, (B, T, I), jnp.float32)

    out = nutrition_profiler_forward(scan_history, kparams)
    out = jax.block_until_ready(out)

    ref = reference_forward(scan_history, native)
    assert out.shape == (B, 16)
    assert jnp.allclose(out, ref, atol=1e-4, rtol=1e-4), "mismatch vs reference"

    print("KERNEL_OK")
</pallas_src>

<mosaic_0001>
module attributes {stable_mosaic.version = 11 : i64} {
  func.func @_lstm_fc_kernel(%arg0: memref<2x8x4xf32, #tpu.memory_space<vmem>>, %arg1: memref<4x128xf32, #tpu.memory_space<vmem>>, %arg2: memref<32x128xf32, #tpu.memory_space<vmem>>, %arg3: memref<1x128xf32, #tpu.memory_space<vmem>>, %arg4: memref<32x16xf32, #tpu.memory_space<vmem>>, %arg5: memref<1x16xf32, #tpu.memory_space<vmem>>, %arg6: memref<2x16xf32, #tpu.memory_space<vmem>>) attributes {dimension_semantics = [], scalar_prefetch = 0 : i64, scratch_operands = 0 : i64, tpu.core_type = #tpu.core_type<tc>} {
    %c0 = arith.constant 0 : index
    %c0_0 = arith.constant 0 : index
    %0 = vector.load %arg2[%c0, %c0_0] : memref<32x128xf32, #tpu.memory_space<vmem>>, vector<32x128xf32>
    %c0_1 = arith.constant 0 : index
    %c0_2 = arith.constant 0 : index
    %1 = vector.load %arg3[%c0_1, %c0_2] : memref<1x128xf32, #tpu.memory_space<vmem>>, vector<1x128xf32>
    %c0_3 = arith.constant 0 : index
    %c0_4 = arith.constant 0 : index
    %c0_5 = arith.constant 0 : index
    %2 = vector.load %arg0[%c0_3, %c0_4, %c0_5] : memref<2x8x4xf32, #tpu.memory_space<vmem>>, vector<2x8x4xf32>
    %cst = arith.constant 0.000000e+00 : f32
    %3 = vector.broadcast %cst : f32 to vector<6x4xf32>
    %4 = vector.extract_strided_slice %2 {offsets = [0, 0, 0], sizes = [2, 1, 4], strides = [1, 1, 1]} : vector<2x8x4xf32> to vector<2x1x4xf32>
    %5 = vector.shape_cast %4 : vector<2x1x4xf32> to vector<2x4xf32>
    %6 = vector.extract_strided_slice %2 {offsets = [0, 1, 0], sizes = [2, 1, 4], strides = [1, 1, 1]} : vector<2x8x4xf32> to vector<2x1x4xf32>
    %7 = vector.shape_cast %6 : vector<2x1x4xf32> to vector<2x4xf32>
    %8 = vector.extract_strided_slice %2 {offsets = [0, 2, 0], sizes = [2, 1, 4], strides = [1, 1, 1]} : vector<2x8x4xf32> to vector<2x1x4xf32>
    %9 = vector.shape_cast %8 : vector<2x1x4xf32> to vector<2x4xf32>
    %10 = vector.extract_strided_slice %2 {offsets = [0, 3, 0], sizes = [2, 1, 4], strides = [1, 1, 1]} : vector<2x8x4xf32> to vector<2x1x4xf32>
    %11 = vector.shape_cast %10 : vector<2x1x4xf32> to vector<2x4xf32>
    %12 = vector.extract_strided_slice %2 {offsets = [0, 4, 0], sizes = [2, 1, 4], strides = [1, 1, 1]} : vector<2x8x4xf32> to vector<2x1x4xf32>
    %13 = vector.shape_cast %12 : vector<2x1x4xf32> to vector<2x4xf32>
    %14 = vector.extract_strided_slice %2 {offsets = [0, 5, 0], sizes = [2, 1, 4], strides = [1, 1, 1]} : vector<2x8x4xf32> to vector<2x1x4xf32>
    %15 = vector.shape_cast %14 : vector<2x1x4xf32> to vector<2x4xf32>
    %16 = vector.extract_strided_slice %2 {offsets = [0, 6, 0], sizes = [2, 1, 4], strides = [1, 1, 1]} : vector<2x8x4xf32> to vector<2x1x4xf32>
    %17 = vector.shape_cast %16 : vector<2x1x4xf32> to vector<2x4xf32>
    %18 = vector.extract_strided_slice %2 {offsets = [0, 7, 0], sizes = [2, 1, 4], strides = [1, 1, 1]} : vector<2x8x4xf32> to vector<2x1x4xf32>
    %19 = vector.shape_cast %18 : vector<2x1x4xf32> to vector<2x4xf32>
    %20 = tpu.concatenate %5, %3, %7, %3, %9, %3, %11, %3, %13, %3, %15, %3, %17, %3, %19, %3 in 0 : vector<2x4xf32>, vector<6x4xf32>, vector<2x4xf32>, vector<6x4xf32>, vector<2x4xf32>, vector<6x4xf32>, vector<2x4xf32>, vector<6x4xf32>, vector<2x4xf32>, vector<6x4xf32>, vector<2x4xf32>, vector<6x4xf32>, vector<2x4xf32>, vector<6x4xf32>, vector<2x4xf32>, vector<6x4xf32> -> vector<64x4xf32>
    %c0_6 = arith.constant 0 : index
    %c0_7 = arith.constant 0 : index
    %21 = vector.load %arg1[%c0_6, %c0_7] : memref<4x128xf32, #tpu.memory_space<vmem>>, vector<4x128xf32>
    %cst_8 = arith.constant dense<0.000000e+00> : vector<64x128xf32>
    %22 = tpu.matmul %20, %21, %cst_8 {dimension_numbers = #tpu.dot_dimension_numbers<[1], [0], [0], [1], [0, 0, 1, 1], [], []>} : vector<64x4xf32>, vector<4x128xf32>, vector<64x128xf32> -> vector<64x128xf32>
    %23 = vector.broadcast %1 : vector<1x128xf32> to vector<64x128xf32>
    %24 = arith.addf %22, %23 : vector<64x128xf32>
    %cst_9 = arith.constant 0.000000e+00 : f32
    %25 = vector.broadcast %cst_9 : f32 to vector<8x32xf32>
    %cst_10 = arith.constant 0.000000e+00 : f32
    %26 = vector.broadcast %cst_10 : f32 to vector<8x32xf32>
    %27 = vector.extract_strided_slice %24 {offsets = [0, 0], sizes = [8, 128], strides = [1, 1]} : vector<64x128xf32> to vector<8x128xf32>
    %cst_11 = arith.constant dense<0.000000e+00> : vector<8x128xf32>
    %28 = tpu.matmul %25, %0, %cst_11 {dimension_numbers = #tpu.dot_dimension_numbers<[1], [0], [0], [1], [0, 0, 1, 1], [], []>} : vector<8x32xf32>, vector<32x128xf32>, vector<8x128xf32> -> vector<8x128xf32>
    %29 = arith.addf %27, %28 : vector<8x128xf32>
    %30 = arith.negf %29 : vector<8x128xf32>
    %31 = math.exp %30 : vector<8x128xf32>
    %cst_12 = arith.constant 1.000000e+00 : f32
    %32 = vector.broadcast %cst_12 : f32 to vector<8x128xf32>
    %33 = arith.addf %32, %31 : vector<8x128xf32>
    %34 = arith.divf %32, %33 : vector<8x128xf32>
    %35 = math.tanh %29 : vector<8x128xf32>
    %36 = vector.extract_strided_slice %34 {offsets = [0, 0], sizes = [8, 32], strides = [1, 1]} : vector<8x128xf32> to vector<8x32xf32>
    %37 = vector.extract_strided_slice %34 {offsets = [0, 32], sizes = [8, 32], strides = [1, 1]} : vector<8x128xf32> to vector<8x32xf32>
    %38 = vector.extract_strided_slice %34 {offsets = [0, 64], sizes = [8, 32], strides = [1, 1]} : vector<8x128xf32> to vector<8x32xf32>
    %39 = vector.extract_strided_slice %35 {offsets = [0, 96], sizes = [8, 32], strides = [1, 1]} : vector<8x128xf32> to vector<8x32xf32>
    %40 = arith.mulf %37, %26 : vector<8x32xf32>
    %41 = arith.mulf %36, %39 : vector<8x32xf32>
    %42 = arith.addf %40, %41 : vector<8x32xf32>
    %43 = math.tanh %42 : vector<8x32xf32>
    %44 = arith.mulf %38, %43 : vector<8x32xf32>
    %45 = vector.extract_strided_slice %24 {offsets = [8, 0], sizes = [8, 128], strides = [1, 1]} : vector<64x128xf32> to vector<8x128xf32>
    %cst_13 = arith.constant dense<0.000000e+00> : vector<8x128xf32>
    %46 = tpu.matmul %44, %0, %cst_13 {dimension_numbers = #tpu.dot_dimension_numbers<[1], [0], [0], [1], [0, 0, 1, 1], [], []>} : vector<8x32xf32>, vector<32x128xf32>, vector<8x128xf32> -> vector<8x128xf32>
    %47 = arith.addf %45, %46 : vector<8x128xf32>
    %48 = arith.negf %47 : vector<8x128xf32>
    %49 = math.exp %48 : vector<8x128xf32>
    %cst_14 = arith.constant 1.000000e+00 : f32
    %50 = vector.broadcast %cst_14 : f32 to vector<8x128xf32>
    %51 = arith.addf %50, %49 : vector<8x128xf32>
    %52 = arith.divf %50, %51 : vector<8x128xf32>
    %53 = math.tanh %47 : vector<8x128xf32>
    %54 = vector.extract_strided_slice %52 {offsets = [0, 0], sizes = [8, 32], strides = [1, 1]} : vector<8x128xf32> to vector<8x32xf32>
    %55 = vector.extract_strided_slice %52 {offsets = [0, 32], sizes = [8, 32], strides = [1, 1]} : vector<8x128xf32> to vector<8x32xf32>
    %56 = vector.extract_strided_slice %52 {offsets = [0, 64], sizes = [8, 32], strides = [1, 1]} : vector<8x128xf32> to vector<8x32xf32>
    %57 = vector.extract_strided_slice %53 {offsets = [0, 96], sizes = [8, 32], strides = [1, 1]} : vector<8x128xf32> to vector<8x32xf32>
    %58 = arith.mulf %55, %42 : vector<8x32xf32>
    %59 = arith.mulf %54, %57 : vector<8x32xf32>
    %60 = arith.addf %58, %59 : vector<8x32xf32>
    %61 = math.tanh %60 : vector<8x32xf32>
    %62 = arith.mulf %56, %61 : vector<8x32xf32>
    %63 = vector.extract_strided_slice %24 {offsets = [16, 0], sizes = [8, 128], strides = [1, 1]} : vector<64x128xf32> to vector<8x128xf32>
    %cst_15 = arith.constant dense<0.000000e+00> : vector<8x128xf32>
    %64 = tpu.matmul %62, %0, %cst_15 {dimension_numbers = #tpu.dot_dimension_numbers<[1], [0], [0], [1], [0, 0, 1, 1], [], []>} : vector<8x32xf32>, vector<32x128xf32>, vector<8x128xf32> -> vector<8x128xf32>
    %65 = arith.addf %63, %64 : vector<8x128xf32>
    %66 = arith.negf %65 : vector<8x128xf32>
    %67 = math.exp %66 : vector<8x128xf32>
    %cst_16 = arith.constant 1.000000e+00 : f32
    %68 = vector.broadcast %cst_16 : f32 to vector<8x128xf32>
    %69 = arith.addf %68, %67 : vector<8x128xf32>
    %70 = arith.divf %68, %69 : vector<8x128xf32>
    %71 = math.tanh %65 : vector<8x128xf32>
    %72 = vector.extract_strided_slice %70 {offsets = [0, 0], sizes = [8, 32], strides = [1, 1]} : vector<8x128xf32> to vector<8x32xf32>
    %73 = vector.extract_strided_slice %70 {offsets = [0, 32], sizes = [8, 32], strides = [1, 1]} : vector<8x128xf32> to vector<8x32xf32>
    %74 = vector.extract_strided_slice %70 {offsets = [0, 64], sizes = [8, 32], strides = [1, 1]} : vector<8x128xf32> to vector<8x32xf32>
    %75 = vector.extract_strided_slice %71 {offsets = [0, 96], sizes = [8, 32], strides = [1, 1]} : vector<8x128xf32> to vector<8x32xf32>
    %76 = arith.mulf %73, %60 : vector<8x32xf32>
    %77 = arith.mulf %72, %75 : vector<8x32xf32>
    %78 = arith.addf %76, %77 : vector<8x32xf32>
    %79 = math.tanh %78 : vector<8x32xf32>
    %80 = arith.mulf %74, %79 : vector<8x32xf32>
    %81 = vector.extract_strided_slice %24 {offsets = [24, 0], sizes = [8, 128], strides = [1, 1]} : vector<64x128xf32> to vector<8x128xf32>
    %cst_17 = arith.constant dense<0.000000e+00> : vector<8x128xf32>
    %82 = tpu.matmul %80, %0, %cst_17 {dimension_numbers = #tpu.dot_dimension_numbers<[1], [0], [0], [1], [0, 0, 1, 1], [], []>} : vector<8x32xf32>, vector<32x128xf32>, vector<8x128xf32> -> vector<8x128xf32>
    %83 = arith.addf %81, %82 : vector<8x128xf32>
    %84 = arith.negf %83 : vector<8x128xf32>
    %85 = math.exp %84 : vector<8x128xf32>
    %cst_18 = arith.constant 1.000000e+00 : f32
    %86 = vector.broadcast %cst_18 : f32 to vector<8x128xf32>
    %87 = arith.addf %86, %85 : vector<8x128xf32>
    %88 = arith.divf %86, %87 : vector<8x128xf32>
    %89 = math.tanh %83 : vector<8x128xf32>
    %90 = vector.extract_strided_slice %88 {offsets = [0, 0], sizes = [8, 32], strides = [1, 1]} : vector<8x128xf32> to vector<8x32xf32>
    %91 = vector.extract_strided_slice %88 {offsets = [0, 32], sizes = [8, 32], strides = [1, 1]} : vector<8x128xf32> to vector<8x32xf32>
    %92 = vector.extract_strided_slice %88 {offsets = [0, 64], sizes = [8, 32], strides = [1, 1]} : vector<8x128xf32> to vector<8x32xf32>
    %93 = vector.extract_strided_slice %89 {offsets = [0, 96], sizes = [8, 32], strides = [1, 1]} : vector<8x128xf32> to vector<8x32xf32>
    %94 = arith.mulf %91, %78 : vector<8x32xf32>
    %95 = arith.mulf %90, %93 : vector<8x32xf32>
    %96 = arith.addf %94, %95 : vector<8x32xf32>
    %97 = math.tanh %96 : vector<8x32xf32>
    %98 = arith.mulf %92, %97 : vector<8x32xf32>
    %99 = vector.extract_strided_slice %24 {offsets = [32, 0], sizes = [8, 128], strides = [1, 1]} : vector<64x128xf32> to vector<8x128xf32>
    %cst_19 = arith.constant dense<0.000000e+00> : vector<8x128xf32>
    %100 = tpu.matmul %98, %0, %cst_19 {dimension_numbers = #tpu.dot_dimension_numbers<[1], [0], [0], [1], [0, 0, 1, 1], [], []>} : vector<8x32xf32>, vector<32x128xf32>, vector<8x128xf32> -> vector<8x128xf32>
    %101 = arith.addf %99, %100 : vector<8x128xf32>
    %102 = arith.negf %101 : vector<8x128xf32>
    %103 = math.exp %102 : vector<8x128xf32>
    %cst_20 = arith.constant 1.000000e+00 : f32
    %104 = vector.broadcast %cst_20 : f32 to vector<8x128xf32>
    %105 = arith.addf %104, %103 : vector<8x128xf32>
    %106 = arith.divf %104, %105 : vector<8x128xf32>
    %107 = math.tanh %101 : vector<8x128xf32>
    %108 = vector.extract_strided_slice %106 {offsets = [0, 0], sizes = [8, 32], strides = [1, 1]} : vector<8x128xf32> to vector<8x32xf32>
    %109 = vector.extract_strided_slice %106 {offsets = [0, 32], sizes = [8, 32], strides = [1, 1]} : vector<8x128xf32> to vector<8x32xf32>
    %110 = vector.extract_strided_slice %106 {offsets = [0, 64], sizes = [8, 32], strides = [1, 1]} : vector<8x128xf32> to vector<8x32xf32>
    %111 = vector.extract_strided_slice %107 {offsets = [0, 96], sizes = [8, 32], strides = [1, 1]} : vector<8x128xf32> to vector<8x32xf32>
    %112 = arith.mulf %109, %96 : vector<8x32xf32>
    %113 = arith.mulf %108, %111 : vector<8x32xf32>
    %114 = arith.addf %112, %113 : vector<8x32xf32>
    %115 = math.tanh %114 : vector<8x32xf32>
    %116 = arith.mulf %110, %115 : vector<8x32xf32>
    %117 = vector.extract_strided_slice %24 {offsets = [40, 0], sizes = [8, 128], strides = [1, 1]} : vector<64x128xf32> to vector<8x128xf32>
    %cst_21 = arith.constant dense<0.000000e+00> : vector<8x128xf32>
    %118 = tpu.matmul %116, %0, %cst_21 {dimension_numbers = #tpu.dot_dimension_numbers<[1], [0], [0], [1], [0, 0, 1, 1], [], []>} : vector<8x32xf32>, vector<32x128xf32>, vector<8x128xf32> -> vector<8x128xf32>
    %119 = arith.addf %117, %118 : vector<8x128xf32>
    %120 = arith.negf %119 : vector<8x128xf32>
    %121 = math.exp %120 : vector<8x128xf32>
    %cst_22 = arith.constant 1.000000e+00 : f32
    %122 = vector.broadcast %cst_22 : f32 to vector<8x128xf32>
    %123 = arith.addf %122, %121 : vector<8x128xf32>
    %124 = arith.divf %122, %123 : vector<8x128xf32>
    %125 = math.tanh %119 : vector<8x128xf32>
    %126 = vector.extract_strided_slice %124 {offsets = [0, 0], sizes = [8, 32], strides = [1, 1]} : vector<8x128xf32> to vector<8x32xf32>
    %127 = vector.extract_strided_slice %124 {offsets = [0, 32], sizes = [8, 32], strides = [1, 1]} : vector<8x128xf32> to vector<8x32xf32>
    %128 = vector.extract_strided_slice %124 {offsets = [0, 64], sizes = [8, 32], strides = [1, 1]} : vector<8x128xf32> to vector<8x32xf32>
    %129 = vector.extract_strided_slice %125 {offsets = [0, 96], sizes = [8, 32], strides = [1, 1]} : vector<8x128xf32> to vector<8x32xf32>
    %130 = arith.mulf %127, %114 : vector<8x32xf32>
    %131 = arith.mulf %126, %129 : vector<8x32xf32>
    %132 = arith.addf %130, %131 : vector<8x32xf32>
    %133 = math.tanh %132 : vector<8x32xf32>
    %134 = arith.mulf %128, %133 : vector<8x32xf32>
    %135 = vector.extract_strided_slice %24 {offsets = [48, 0], sizes = [8, 128], strides = [1, 1]} : vector<64x128xf32> to vector<8x128xf32>
    %cst_23 = arith.constant dense<0.000000e+00> : vector<8x128xf32>
    %136 = tpu.matmul %134, %0, %cst_23 {dimension_numbers = #tpu.dot_dimension_numbers<[1], [0], [0], [1], [0, 0, 1, 1], [], []>} : vector<8x32xf32>, vector<32x128xf32>, vector<8x128xf32> -> vector<8x128xf32>
    %137 = arith.addf %135, %136 : vector<8x128xf32>
    %138 = arith.negf %137 : vector<8x128xf32>
    %139 = math.exp %138 : vector<8x128xf32>
    %cst_24 = arith.constant 1.000000e+00 : f32
    %140 = vector.broadcast %cst_24 : f32 to vector<8x128xf32>
    %141 = arith.addf %140, %139 : vector<8x128xf32>
    %142 = arith.divf %140, %141 : vector<8x128xf32>
    %143 = math.tanh %137 : vector<8x128xf32>
    %144 = vector.extract_strided_slice %142 {offsets = [0, 0], sizes = [8, 32], strides = [1, 1]} : vector<8x128xf32> to vector<8x32xf32>
    %145 = vector.extract_strided_slice %142 {offsets = [0, 32], sizes = [8, 32], strides = [1, 1]} : vector<8x128xf32> to vector<8x32xf32>
    %146 = vector.extract_strided_slice %142 {offsets = [0, 64], sizes = [8, 32], strides = [1, 1]} : vector<8x128xf32> to vector<8x32xf32>
    %147 = vector.extract_strided_slice %143 {offsets = [0, 96], sizes = [8, 32], strides = [1, 1]} : vector<8x128xf32> to vector<8x32xf32>
    %148 = arith.mulf %145, %132 : vector<8x32xf32>
    %149 = arith.mulf %144, %147 : vector<8x32xf32>
    %150 = arith.addf %148, %149 : vector<8x32xf32>
    %151 = math.tanh %150 : vector<8x32xf32>
    %152 = arith.mulf %146, %151 : vector<8x32xf32>
    %153 = vector.extract_strided_slice %24 {offsets = [56, 0], sizes = [8, 128], strides = [1, 1]} : vector<64x128xf32> to vector<8x128xf32>
    %cst_25 = arith.constant dense<0.000000e+00> : vector<8x128xf32>
    %154 = tpu.matmul %152, %0, %cst_25 {dimension_numbers = #tpu.dot_dimension_numbers<[1], [0], [0], [1], [0, 0, 1, 1], [], []>} : vector<8x32xf32>, vector<32x128xf32>, vector<8x128xf32> -> vector<8x128xf32>
    %155 = arith.addf %153, %154 : vector<8x128xf32>
    %156 = arith.negf %155 : vector<8x128xf32>
    %157 = math.exp %156 : vector<8x128xf32>
    %cst_26 = arith.constant 1.000000e+00 : f32
    %158 = vector.broadcast %cst_26 : f32 to vector<8x128xf32>
    %159 = arith.addf %158, %157 : vector<8x128xf32>
    %160 = arith.divf %158, %159 : vector<8x128xf32>
    %161 = math.tanh %155 : vector<8x128xf32>
    %162 = vector.extract_strided_slice %160 {offsets = [0, 0], sizes = [8, 32], strides = [1, 1]} : vector<8x128xf32> to vector<8x32xf32>
    %163 = vector.extract_strided_slice %160 {offsets = [0, 32], sizes = [8, 32], strides = [1, 1]} : vector<8x128xf32> to vector<8x32xf32>
    %164 = vector.extract_strided_slice %160 {offsets = [0, 64], sizes = [8, 32], strides = [1, 1]} : vector<8x128xf32> to vector<8x32xf32>
    %165 = vector.extract_strided_slice %161 {offsets = [0, 96], sizes = [8, 32], strides = [1, 1]} : vector<8x128xf32> to vector<8x32xf32>
    %166 = arith.mulf %163, %150 : vector<8x32xf32>
    %167 = arith.mulf %162, %165 : vector<8x32xf32>
    %168 = arith.addf %166, %167 : vector<8x32xf32>
    %169 = math.tanh %168 : vector<8x32xf32>
    %170 = arith.mulf %164, %169 : vector<8x32xf32>
    %c0_27 = arith.constant 0 : index
    %c0_28 = arith.constant 0 : index
    %171 = vector.load %arg4[%c0_27, %c0_28] : memref<32x16xf32, #tpu.memory_space<vmem>>, vector<32x16xf32>
    %cst_29 = arith.constant dense<0.000000e+00> : vector<8x16xf32>
    %172 = tpu.matmul %170, %171, %cst_29 {dimension_numbers = #tpu.dot_dimension_numbers<[1], [0], [0], [1], [0, 0, 1, 1], [], []>} : vector<8x32xf32>, vector<32x16xf32>, vector<8x16xf32> -> vector<8x16xf32>
    %c0_30 = arith.constant 0 : index
    %c0_31 = arith.constant 0 : index
    %173 = vector.load %arg5[%c0_30, %c0_31] : memref<1x16xf32, #tpu.memory_space<vmem>>, vector<1x16xf32>
    %174 = vector.broadcast %173 : vector<1x16xf32> to vector<8x16xf32>
    %175 = arith.addf %172, %174 : vector<8x16xf32>
    %176 = vector.extract_strided_slice %175 {offsets = [0, 0], sizes = [2, 16], strides = [1, 1]} : vector<8x16xf32> to vector<2x16xf32>
    %c0_32 = arith.constant 0 : index
    %c0_33 = arith.constant 0 : index
    %177 = vector.load %arg6[%c0_32, %c0_33] : memref<2x16xf32, #tpu.memory_space<vmem>>, vector<2x16xf32>
    tpu.vector_store %arg6[%c0_32, %c0_33], %176 {strides = array<i32>} : memref<2x16xf32, #tpu.memory_space<vmem>>, vector<2x16xf32>,
    return
  }
}

</mosaic_0001>

<bundles_post_ra>
// kernel: nutrition_profiler_forward.1
= control target key start
LH: loop header
LB: loop body
LE: loop exit
PB: predicated region body
PF: predicated region fallthrough
CT: control target
= control target key end

     0   :  { %vm105_vm0 = vcmask 1043456   ;;  %v1457_v3 = vmov 0.0|0.0   ;;  %vm34_vm1 = vcmask 1041409   ;;  %vm64_vm2 = vcmask 1041408   ;;  %s1716_s0 = inlined_call_operand.vmem [shape: f32[2,8,4], index: 0, kind: input, shape index: {}]   ;;  %s1717_s1 = inlined_call_operand.vmem [shape: f32[4,128], index: 1, kind: input, shape index: {}]   ;;  %s1718_s2 = inlined_call_operand.vmem [shape: f32[32,128], index: 2, kind: input, shape index: {}]   ;;  %s1719_s3 = inlined_call_operand.vmem [shape: f32[1,128], index: 3, kind: input, shape index: {}]   ;;  %s1720_s4 = inlined_call_operand.vmem [shape: f32[32,16], index: 4, kind: input, shape index: {}]   ;;  %s1721_s5 = inlined_call_operand.vmem [shape: f32[1,16], index: 5, kind: input, shape index: {}]   ;;  %s1722_s6 = inlined_call_operand.hbm [shape: f32[2,16], index: 6, kind: output, shape index: {}]  }
   0x1   :  { %v24_v0 = vld [vmem:[%s1718_s2] sm:$0xff]  ;;  %v25_v1 = vld [vmem:[%s1718_s2 + $0x8] sm:$0xff]  ;;  %1309 = vmatprep.subr.bf16.mxu1 %v1457_v3  ;;  %v26_v7 = vld [vmem:[%s1718_s2 + $0x10] sm:$0xff]  ;;  %vm80_vm3 = vcmask 31744   ;;  %vm1458_vm4 = vmmov 0   ;;  %v1459_v12 = vmov 0.0  }
   0x2   :  { %v73_v2 = vld [vmem:[%s1717_s1] sm:$0xf]  ;;  %v1508_v4 = vpack.c.bf16 %v25_v1, %v24_v0  ;;  %v1518_v6 = vld [vmem:[%s1716_s0 + $0x8] sm:$0xff]  ;;  %v27_v10 = vld [vmem:[%s1718_s2 + $0x18] sm:$0xff]  ;;  %1218 = vmatprep.mubr.msk.f32.mxu1 %vm1458_vm4, %v1459_v12 }
   0x3   :  { %1196 = vmatprep.subr.msk.mxu0 %vm105_vm0, %v73_v2  ;;  %v1513_v5 = vld [vmem:[%s1716_s0] sm:$0xff]  ;;  %v33_v8 = vrot.slane %v1518_v6, 7  ;;  %v1529_v11 = vpack.c.bf16 %v27_v10, %v26_v7 }
   0x4   :  { %1197 = vmatpush3.msk.msra.mxu0 %vm105_vm0, %v73_v2  ;;  %v37_v9 = vrot.slane %v1513_v5, 1  ;;  %1311 = vmatpush3.bf16.msra.mxu1 %v1508_v4 }
   0x5   :  { %11 = vsyncpa [#allocation3], 0  ;;  %v35_v13 = vsel %vm34_vm1, %v33_v8, %v1513_v5  ;;  %1312 = vmatprep.subr.bf16.mxu1 %v1457_v3  ;;  %1321 = vmatprep.subr.bf16.mxu0 %v1457_v3  ;;  %v1559_v17 = vld [vmem:[%s1719_s3] ss:$0 sm:$0xff]  ;;  %s1460_s10 = smov 32   ;;  %s1461_s3 = smov 64  }
   0x6   :  { %v38_v14 = vsel %vm34_vm1, %v1518_v6, %v37_v9  ;;  %v65_v15 = vsel %vm64_vm2, %v35_v13, 0.0  ;;  %vm214_vm5 = vcmask 261120   ;;  %v40_v52 = vrot.slane %v1513_v5, 2 }
   0x7   :  { %v66_v16 = vsel %vm64_vm2, %v38_v14, 0.0  ;;  %1198 = vmatprep.mubr.msk.f32.mxu0 %vm80_vm3, %v65_v15  ;;  %v41_v53 = vrot.slane %v1518_v6, 1  ;;  %v44_v54 = vrot.slane %v1513_v5, 3  ;;  %v45_v55 = vrot.slane %v1518_v6, 2 }
   0x8   :  { %1199 = vmatmul.mubr.msk.f32.vlgmr.msra.gmra.mrb[0].mxu0 %vm80_vm3, %v66_v16  ;;  %1314 = vmatpush3.bf16.msra.mxu1 %v1529_v11  ;;  %v48_v56 = vrot.slane %v1513_v5, 4  ;;  %v49_v57 = vrot.slane %v1518_v6, 3  ;;  %v52_v58 = vrot.slane %v1513_v5, 5  ;;  %v53_v60 = vrot.slane %v1518_v6, 4 }
   0x9   :  { %1315 = vmatprep.subr.bf16.mxu1 %v1457_v3  ;;  %1323 = vmatpush3.bf16.msra.mxu0 %v1508_v4  ;;  %v42_v59 = vsel %vm34_vm1, %v41_v53, %v40_v52  ;;  %v56_v61 = vrot.slane %v1513_v5, 6  ;;  %v57_v62 = vrot.slane %v1518_v6, 5  ;;  %v46_v0 = vsel %vm34_vm1, %v45_v55, %v44_v54 }
   0xa   :  { %1324 = vmatprep.subr.bf16.mxu0 %v1457_v3  ;;  %v67_v63 = vsel %vm64_vm2, %v42_v59, 0.0  ;;  %v50_v1 = vsel %vm34_vm1, %v49_v57, %v48_v56  ;;  %v60_v2 = vrot.slane %v1513_v5, 7  ;;  %v68_v7 = vsel %vm64_vm2, %v46_v0, 0.0 }
   0xb   :  { %1219 = vmatmul.mubr.f32.vlgmr.msra.gmra.mrb[0].mxu1 %v1459_v12  ;;  %1201 = vmatprep.mubr.msk.f32.mxu0 %vm80_vm3, %v67_v63  ;;  %v69_v8 = vsel %vm64_vm2, %v50_v1, 0.0  ;;  %v54_v9 = vsel %vm34_vm1, %v53_v60, %v52_v58  ;;  %v58_v10 = vsel %vm34_vm1, %v57_v62, %v56_v61  ;;  %v61_v13 = vrot.slane %v1518_v6, 6 }
   0xc   :  { %1317 = vmatpush3.bf16.msra.mxu1 %v1508_v4  ;;  %1229 = vmatprep.mubr.msk.f32.mxu1 %vm1458_vm4, %v1459_v12  ;;  %v70_v14 = vsel %vm64_vm2, %v54_v9, 0.0  ;;  %v71_v5 = vsel %vm64_vm2, %v58_v10, 0.0  ;;  %vm1099_vm6 = vcmask 123904  }
   0xd   :  { %1318 = vmatprep.subr.bf16.mxu1 %v1457_v3  ;;  %1326 = vmatpush3.bf16.msra.mxu0 %v1529_v11  ;;  %v62_v15 = vsel %vm34_vm1, %v61_v13, %v60_v2 }
   0xe   :  { %1333 = vmatprep.subr.bf16.mxu0 %v1457_v3  ;;  %1202 = vmatmul.mubr.msk.f32.gmra.mrb[2].mxu0 %vm80_vm3, %v68_v7 }
   0xf   :  { %1204 = vmatprep.mubr.msk.f32.mxu0 %vm80_vm3, %v69_v8 }
  0x10   :  { %1320 = vmatpush3.bf16.msra.mxu1 %v1529_v11 }
  0x11   :  { %1327 = vmatprep.subr.bf16.mxu1 %v1457_v3 }
  0x12   :  { %1205 = vmatmul.mubr.msk.f32.gmra.mrb[4].mxu0 %vm80_vm3, %v70_v14 }
  0x13   :  { %1207 = vmatprep.mubr.msk.f32.mxu0 %vm80_vm3, %v71_v5 }
  0xdb   :  { %v1200_v18 = vpop.f32.mrb[0].mxu0 }
  0xdc   :  { %v175_v19 = vpop.f32.mrb[1].mxu0  ;;  %v181_v38 = vadd.f32 %v1200_v18, %v1559_v17  ;;  %v72_v18 = vsel %vm64_vm2, %v62_v15, 0.0 }
  0xdd   :  { %v176_v20 = vadd.f32 %v1559_v17, %v175_v19  ;;  %1208 = vmatmul.mubr.msk.f32.gmra.mrb[6].mxu0 %vm80_vm3, %v72_v18 }
  0xde   :  { %v284_v21 = vpop.f32.mrb[0].mxu1  ;;  %1240 = vmatprep.mubr.msk.f32.mxu0 %vm1458_vm4, %v1459_v12 }
  0xdf   :  { %v288_v22 = vadd.f32 %v284_v21, %v176_v20  ;;  %v1220_v23 = vpop.f32.mrb[1].mxu1 }
  0xe1   :  { %1369 = vtanh.f32 %v288_v22  ;;  %v1125_v25 = vmul.f32 -1.442695, %v288_v22  ;;  %v1203_v20 = vpop.f32.mrb[2].mxu0 }
  0xe2   :  { %v185_v21 = vpop.f32.mrb[3].mxu0 }
  0xe3   :  { %1371 = vpow2.f32 %v1125_v25 }
  0xe5   :  { %v1613_v22 = vpop.f32.mrb[4].mxu0 }
  0xe6   :  { %v1615_v23 = vpop.f32.mrb[5].mxu0 }
  0xe7   :  { %v196_v63 = vadd.f32 %v1559_v17, %v1615_v23  ;;  %v201_v23 = vadd.f32 %v1613_v22, %v1559_v17 }
  0xeb   :  { %v1370_v24 = vpop.eup %1369 }
  0xec   :  { %298 = vrot.lane.b32.xlu0 %v1370_v24, %s1460_s10 }
  0xed   :  { %v1372_v26 = vpop.eup %1371 }
  0xee   :  { %v292_v27 = vadd.f32 1.0, %v1372_v26 }
  0xf0   :  { %1373 = vrcp.f32 %v292_v27  ;;  %v186_v27 = vadd.f32 %v1559_v17, %v185_v21 }
  0xfa   :  { %v1374_v28 = vpop.eup %1373 }
  0xfb   :  { %v296_v31 = vmul.f32 0.0, %v1374_v28 }
 0x15e   :  { %v299_v29 = vpop.permute.xlu0 %298 }
 0x15f   :  { %v301_v30 = vmul.f32 %v1374_v28, %v299_v29 }
 0x161   :  { %303 = vrot.lane.b32.xlu0 %v301_v30, %s1460_s10 }
 0x1b0   :  { %v1617_v24 = vpop.f32.mrb[6].mxu0 }
 0x1b1   :  { %v1619_v25 = vpop.f32.mrb[7].mxu0 }
 0x1d3   :  { %v304_v32 = vpop.permute.xlu0 %303 }
 0x1d4   :  { %v306_v33 = vadd.f32 %v304_v32, %v296_v31 }
 0x1d6   :  { %1375 = vtanh.f32 %v306_v33 }
 0x1e0   :  { %v1376_v34 = vpop.eup %1375 }
 0x1e1   :  { %309 = vrot.lane.b32.xlu1 %v1376_v34, %s1460_s10 }
 0x253   :  { %v310_v35 = vpop.permute.xlu1 %309 }
 0x254   :  { %v312_v36 = vmul.f32 %v1374_v28, %v310_v35 }
 0x256   :  { %314 = vrot.lane.b32.xlu1 %v312_v36, %s1461_s3 }
 0x2c8   :  { %v315_v37 = vpop.permute.xlu1 %314 }
 0x2c9   :  { %1230 = vmatmul.mubr.msk.f32.vlgmr.msra.gmra.mrb[2].mxu1 %vm214_vm5, %v315_v37 }
 0x2ca   :  { %1329 = vmatpush3.bf16.msra.mxu1 %v1508_v4  ;;  %1251 = vmatprep.mubr.msk.f32.mxu1 %vm1458_vm4, %v1459_v12 }
 0x2cb   :  { %1330 = vmatprep.subr.bf16.mxu1 %v1457_v3 }
 0x2ce   :  { %1332 = vmatpush3.bf16.msra.mxu1 %v1529_v11 }
 0x2cf   :  { %1339 = vmatprep.subr.bf16.mxu1 %v1457_v3 }
 0x39c   :  { %v384_v39 = vpop.f32.mrb[2].mxu1 }
 0x39d   :  { %v388_v40 = vadd.f32 %v384_v39, %v181_v38  ;;  %v1231_v41 = vpop.f32.mrb[3].mxu1 }
 0x39f   :  { %1377 = vtanh.f32 %v388_v40  ;;  %v1127_v43 = vmul.f32 -1.442695, %v388_v40 }
 0x3a1   :  { %1379 = vpow2.f32 %v1127_v43 }
 0x3a9   :  { %v1378_v42 = vpop.eup %1377 }
 0x3aa   :  { %398 = vrot.lane.b32.xlu0 %v1378_v42, %s1460_s10 }
 0x3ab   :  { %v1380_v44 = vpop.eup %1379 }
 0x3ac   :  { %v392_v45 = vadd.f32 1.0, %v1380_v44 }
 0x3ae   :  { %1381 = vrcp.f32 %v392_v45  ;;  %v191_v45 = vadd.f32 %v1203_v20, %v1559_v17 }
 0x3b8   :  { %v1382_v46 = vpop.eup %1381 }
 0x3b9   :  { %v396_v49 = vmul.f32 %v1382_v46, %v306_v33 }
 0x41c   :  { %v399_v47 = vpop.permute.xlu0 %398 }
 0x41d   :  { %v401_v48 = vmul.f32 %v1382_v46, %v399_v47 }
 0x41f   :  { %403 = vrot.lane.b32.xlu1 %v401_v48, %s1460_s10 }
 0x491   :  { %v404_v50 = vpop.permute.xlu1 %403 }
 0x492   :  { %v1576_v51 = vadd.f32 %v404_v50, %v396_v49 }
 0x494   :  { %1383 = vtanh.f32 %v1576_v51 }
 0x49e   :  { %v1384_v16 = vpop.eup %1383 }
 0x49f   :  { %409 = vrot.lane.b32.xlu0 %v1384_v16, %s1460_s10 }
 0x511   :  { %v410_v6 = vpop.permute.xlu0 %409 }
 0x512   :  { %v412_v19 = vmul.f32 %v1382_v46, %v410_v6 }
 0x514   :  { %414 = vrot.lane.b32.xlu1 %v412_v19, %s1461_s3 }
 0x586   :  { %v415_v26 = vpop.permute.xlu1 %414 }
 0x587   :  { %1241 = vmatmul.mubr.msk.f32.vlgmr.msra.gmra.mrb[8].mxu0 %vm214_vm5, %v415_v26 }
 0x588   :  { %1335 = vmatpush3.bf16.msra.mxu0 %v1508_v4  ;;  %1262 = vmatprep.mubr.msk.f32.mxu0 %vm1458_vm4, %v1459_v12 }
 0x589   :  { %1336 = vmatprep.subr.bf16.mxu0 %v1457_v3 }
 0x58c   :  { %1338 = vmatpush3.bf16.msra.mxu0 %v1529_v11 }
 0x58d   :  { %1345 = vmatprep.subr.bf16.mxu0 %v1457_v3 }
 0x65a   :  { %v484_v28 = vpop.f32.mrb[8].mxu0 }
 0x65b   :  { %v488_v29 = vadd.f32 %v484_v28, %v186_v27  ;;  %v1242_v30 = vpop.f32.mrb[9].mxu0 }
 0x65d   :  { %1385 = vtanh.f32 %v488_v29  ;;  %v1129_v32 = vmul.f32 -1.442695, %v488_v29 }
 0x65f   :  { %1387 = vpow2.f32 %v1129_v32 }
 0x667   :  { %v1386_v31 = vpop.eup %1385 }
 0x668   :  { %498 = vrot.lane.b32.xlu0 %v1386_v31, %s1460_s10 }
 0x669   :  { %v1388_v33 = vpop.eup %1387 }
 0x66a   :  { %v492_v34 = vadd.f32 1.0, %v1388_v33 }
 0x66c   :  { %1389 = vrcp.f32 %v492_v34 }
 0x676   :  { %v1390_v35 = vpop.eup %1389 }
 0x677   :  { %v496_v38 = vmul.f32 %v1390_v35, %v1576_v51 }
 0x6da   :  { %v499_v36 = vpop.permute.xlu0 %498 }
 0x6db   :  { %v501_v37 = vmul.f32 %v1390_v35, %v499_v36 }
 0x6dd   :  { %503 = vrot.lane.b32.xlu1 %v501_v37, %s1460_s10 }
 0x74f   :  { %v504_v39 = vpop.permute.xlu1 %503 }
 0x750   :  { %v506_v40 = vadd.f32 %v504_v39, %v496_v38 }
 0x752   :  { %1391 = vtanh.f32 %v506_v40 }
 0x75c   :  { %v1392_v41 = vpop.eup %1391 }
 0x75d   :  { %509 = vrot.lane.b32.xlu0 %v1392_v41, %s1460_s10 }
 0x7cf   :  { %v510_v42 = vpop.permute.xlu0 %509 }
 0x7d0   :  { %v512_v43 = vmul.f32 %v1390_v35, %v510_v42 }
 0x7d2   :  { %514 = vrot.lane.b32.xlu1 %v512_v43, %s1461_s3 }
 0x844   :  { %v515_v44 = vpop.permute.xlu1 %514 }
 0x845   :  { %1252 = vmatmul.mubr.msk.f32.vlgmr.msra.gmra.mrb[4].mxu1 %vm214_vm5, %v515_v44 }
 0x846   :  { %1341 = vmatpush3.bf16.msra.mxu1 %v1508_v4  ;;  %1273 = vmatprep.mubr.msk.f32.mxu1 %vm1458_vm4, %v1459_v12 }
 0x847   :  { %1342 = vmatprep.subr.bf16.mxu1 %v1457_v3 }
 0x84a   :  { %1344 = vmatpush3.bf16.msra.mxu1 %v1529_v11 }
 0x84b   :  { %1351 = vmatprep.subr.bf16.mxu1 %v1457_v3 }
 0x918   :  { %v584_v46 = vpop.f32.mrb[4].mxu1 }
 0x919   :  { %v588_v47 = vadd.f32 %v584_v46, %v191_v45  ;;  %v1253_v48 = vpop.f32.mrb[5].mxu1 }
 0x91b   :  { %1393 = vtanh.f32 %v588_v47  ;;  %v1131_v50 = vmul.f32 -1.442695, %v588_v47 }
 0x91d   :  { %1395 = vpow2.f32 %v1131_v50 }
 0x925   :  { %v1394_v49 = vpop.eup %1393 }
 0x926   :  { %598 = vrot.lane.b32.xlu0 %v1394_v49, %s1460_s10 }
 0x927   :  { %v1396_v51 = vpop.eup %1395 }
 0x928   :  { %v592_v52 = vadd.f32 1.0, %v1396_v51 }
 0x92a   :  { %1397 = vrcp.f32 %v592_v52 }
 0x934   :  { %v1398_v53 = vpop.eup %1397 }
 0x935   :  { %v596_v56 = vmul.f32 %v1398_v53, %v506_v40  ;;  %v206_v40 = vadd.f32 %v1559_v17, %v1619_v25 }
 0x998   :  { %v599_v54 = vpop.permute.xlu0 %598 }
 0x999   :  { %v601_v55 = vmul.f32 %v1398_v53, %v599_v54 }
 0x99b   :  { %603 = vrot.lane.b32.xlu1 %v601_v55, %s1460_s10 }
 0xa0d   :  { %v604_v57 = vpop.permute.xlu1 %603 }
 0xa0e   :  { %v606_v58 = vadd.f32 %v604_v57, %v596_v56  ;;  %v211_v56 = vadd.f32 %v1617_v24, %v1559_v17  ;;  %v1013_v24 = vld [vmem:[%s1720_s4] sm:$0xff] }
 0xa10   :  { %1399 = vtanh.f32 %v606_v58 }
 0xa1a   :  { %v1400_v59 = vpop.eup %1399 }
 0xa1b   :  { %609 = vrot.lane.b32.xlu0 %v1400_v59, %s1460_s10 }
 0xa8d   :  { %v610_v60 = vpop.permute.xlu0 %609 }
 0xa8e   :  { %v612_v61 = vmul.f32 %v1398_v53, %v610_v60 }
 0xa90   :  { %614 = vrot.lane.b32.xlu1 %v612_v61, %s1461_s3 }
 0xb02   :  { %v615_v62 = vpop.permute.xlu1 %614 }
 0xb03   :  { %1263 = vmatmul.mubr.msk.f32.vlgmr.msra.gmra.mrb[10].mxu0 %vm214_vm5, %v615_v62 }
 0xb04   :  { %1347 = vmatpush3.bf16.msra.mxu0 %v1508_v4  ;;  %1284 = vmatprep.mubr.msk.f32.mxu0 %vm1458_vm4, %v1459_v12 }
 0xb05   :  { %1348 = vmatprep.subr.bf16.mxu0 %v1457_v3 }
 0xb08   :  { %1350 = vmatpush3.bf16.msra.mxu0 %v1529_v11 }
 0xb09   :  { %1357 = vmatprep.subr.bf16.mxu0 %v1457_v3 }
 0xbd6   :  { %v684_v0 = vpop.f32.mrb[10].mxu0 }
 0xbd7   :  { %v688_v1 = vadd.f32 %v684_v0, %v196_v63  ;;  %v1264_v2 = vpop.f32.mrb[11].mxu0 }
 0xbd9   :  { %1401 = vtanh.f32 %v688_v1  ;;  %v1133_v8 = vmul.f32 -1.442695, %v688_v1 }
 0xbdb   :  { %1403 = vpow2.f32 %v1133_v8 }
 0xbe3   :  { %v1402_v7 = vpop.eup %1401 }
 0xbe4   :  { %698 = vrot.lane.b32.xlu0 %v1402_v7, %s1460_s10 }
 0xbe5   :  { %v1404_v9 = vpop.eup %1403 }
 0xbe6   :  { %v692_v10 = vadd.f32 1.0, %v1404_v9  ;;  %v1014_v9 = vld [vmem:[%s1720_s4 + $0x8] sm:$0xff] }
 0xbe8   :  { %1405 = vrcp.f32 %v692_v10  ;;  %v1015_v10 = vld [vmem:[%s1720_s4 + $0x10] sm:$0xff] }
 0xbf2   :  { %v1406_v13 = vpop.eup %1405 }
 0xbf3   :  { %v696_v15 = vmul.f32 %v1406_v13, %v606_v58 }
 0xc56   :  { %v699_v14 = vpop.permute.xlu0 %698 }
 0xc57   :  { %v701_v5 = vmul.f32 %v1406_v13, %v699_v14  ;;  %v1016_v14 = vld [vmem:[%s1720_s4 + $0x18] sm:$0xff]  ;;  %s1462_s4 = smov [#allocation2]  }
 0xc58   :  { %s1107_s21 = sshll.u32 %s1462_s4, 4  ;;  %s1108_s21 = int_to_ptr.vmem [resolvable:$true] %s1107_s21 }
 0xc59   :  { %703 = vrot.lane.b32.xlu1 %v701_v5, %s1460_s10  ;;  %v1361_v5 = vpack.c.bf16 %v1016_v14, %v1015_v10  ;;  %s1433_s22 = scalar_lea.vmem %s1108_s21, 32  ;;  %p1438_p1 = scmp.lt.s32.totalorder %s1108_s21, %s1108_s21 }
 0xc5a   :  { %p1434_p0 = scmp.ne.s32.totalorder %s1108_s21, %s1433_s22  ;;  %p1439_p2 = scmp.lt.s32.totalorder %s1433_s22, %s1433_s22 }
 0xc5c   :  { %p1440_p3 = por %p1439_p2, %p1438_p1 }
 0xc5e   :  { %p1441_p4 = pnand %p1440_p3, %p1434_p0 }
 0xccb   :  { %v704_v16 = vpop.permute.xlu1 %703 }
 0xccc   :  { %v706_v18 = vadd.f32 %v704_v16, %v696_v15 }
 0xcce   :  { %1407 = vtanh.f32 %v706_v18 }
 0xcd8   :  { %v1408_v6 = vpop.eup %1407 }
 0xcd9   :  { %709 = vrot.lane.b32.xlu0 %v1408_v6, %s1460_s10 }
 0xd4b   :  { %v710_v19 = vpop.permute.xlu0 %709 }
 0xd4c   :  { %v712_v20 = vmul.f32 %v1406_v13, %v710_v19  ;;  %v1358_v13 = vpack.c.bf16 %v1014_v9, %v1013_v24  ;;  %v1140_v19 = vld [vmem:[%s1721_s5] ss:$0 sm:$0xff] }
 0xd4e   :  { %714 = vrot.lane.b32.xlu1 %v712_v20, %s1461_s3 }
 0xdc0   :  { %v715_v21 = vpop.permute.xlu1 %714 }
 0xdc1   :  { %1274 = vmatmul.mubr.msk.f32.vlgmr.msra.gmra.mrb[6].mxu1 %vm214_vm5, %v715_v21 }
 0xdc2   :  { %1353 = vmatpush3.bf16.msra.mxu1 %v1508_v4  ;;  %1295 = vmatprep.mubr.msk.f32.mxu1 %vm1458_vm4, %v1459_v12 }
 0xdc3   :  { %1354 = vmatprep.subr.bf16.mxu1 %v1457_v3 }
 0xdc6   :  { %1356 = vmatpush3.bf16.msra.mxu1 %v1529_v11 }
 0xe94   :  { %v784_v26 = vpop.f32.mrb[6].mxu1 }
 0xe95   :  { %v788_v27 = vadd.f32 %v784_v26, %v201_v23  ;;  %v1275_v28 = vpop.f32.mrb[7].mxu1 }
 0xe97   :  { %1409 = vtanh.f32 %v788_v27  ;;  %v1135_v30 = vmul.f32 -1.442695, %v788_v27 }
 0xe99   :  { %1411 = vpow2.f32 %v1135_v30 }
 0xea1   :  { %v1410_v29 = vpop.eup %1409 }
 0xea2   :  { %798 = vrot.lane.b32.xlu0 %v1410_v29, %s1460_s10 }
 0xea3   :  { %v1412_v4 = vpop.eup %1411 }
 0xea4   :  { %v792_v31 = vadd.f32 1.0, %v1412_v4 }
 0xea6   :  { %1413 = vrcp.f32 %v792_v31 }
 0xeb0   :  { %v1414_v32 = vpop.eup %1413 }
 0xeb1   :  { %v796_v11 = vmul.f32 %v1414_v32, %v706_v18 }
 0xf14   :  { %v799_v33 = vpop.permute.xlu0 %798 }
 0xf15   :  { %v801_v34 = vmul.f32 %v1414_v32, %v799_v33 }
 0xf17   :  { %803 = vrot.lane.b32.xlu1 %v801_v34, %s1460_s10 }
 0xf89   :  { %v804_v35 = vpop.permute.xlu1 %803 }
 0xf8a   :  { %v806_v22 = vadd.f32 %v804_v35, %v796_v11 }
 0xf8c   :  { %1415 = vtanh.f32 %v806_v22 }
 0xf96   :  { %v1416_v36 = vpop.eup %1415 }
 0xf97   :  { %809 = vrot.lane.b32.xlu0 %v1416_v36, %s1460_s10 }
0x1009   :  { %v810_v37 = vpop.permute.xlu0 %809 }
0x100a   :  { %v812_v38 = vmul.f32 %v1414_v32, %v810_v37 }
0x100c   :  { %814 = vrot.lane.b32.xlu1 %v812_v38, %s1461_s3 }
0x107e   :  { %v815_v39 = vpop.permute.xlu1 %814 }
0x107f   :  { %1285 = vmatmul.mubr.msk.f32.vlgmr.msra.gmra.mrb[12].mxu0 %vm214_vm5, %v815_v39 }
0x1080   :  { %1306 = vmatprep.mubr.msk.f32.mxu0 %vm1458_vm4, %v1459_v12  ;;  %1359 = vmatpush3.bf16.msra.mxu0 %v1358_v13 }
0x1081   :  { %1360 = vmatprep.subr.bf16.mxu0 %v1457_v3 }
0x1084   :  { %1362 = vmatpush3.bf16.msra.mxu0 %v1361_v5 }
0x1152   :  { %v884_v41 = vpop.f32.mrb[12].mxu0 }
0x1153   :  { %v888_v42 = vadd.f32 %v884_v41, %v206_v40  ;;  %v1286_v43 = vpop.f32.mrb[13].mxu0 }
0x1155   :  { %1417 = vtanh.f32 %v888_v42  ;;  %v1137_v45 = vmul.f32 -1.442695, %v888_v42 }
0x1157   :  { %1419 = vpow2.f32 %v1137_v45 }
0x115f   :  { %v1418_v44 = vpop.eup %1417 }
0x1160   :  { %898 = vrot.lane.b32.xlu0 %v1418_v44, %s1460_s10 }
0x1161   :  { %v1420_v46 = vpop.eup %1419 }
0x1162   :  { %v892_v47 = vadd.f32 1.0, %v1420_v46 }
0x1164   :  { %1421 = vrcp.f32 %v892_v47 }
0x116e   :  { %v1422_v48 = vpop.eup %1421 }
0x116f   :  { %v896_v12 = vmul.f32 %v1422_v48, %v806_v22 }
0x11d2   :  { %v899_v49 = vpop.permute.xlu0 %898 }
0x11d3   :  { %v901_v50 = vmul.f32 %v1422_v48, %v899_v49 }
0x11d5   :  { %903 = vrot.lane.b32.xlu1 %v901_v50, %s1460_s10 }
0x1247   :  { %v904_v51 = vpop.permute.xlu1 %903 }
0x1248   :  { %v906_v25 = vadd.f32 %v904_v51, %v896_v12 }
0x124a   :  { %1423 = vtanh.f32 %v906_v25 }
0x1254   :  { %v1424_v52 = vpop.eup %1423 }
0x1255   :  { %909 = vrot.lane.b32.xlu0 %v1424_v52, %s1460_s10 }
0x12c7   :  { %v910_v53 = vpop.permute.xlu0 %909 }
0x12c8   :  { %v912_v54 = vmul.f32 %v1422_v48, %v910_v53 }
0x12ca   :  { %914 = vrot.lane.b32.xlu1 %v912_v54, %s1461_s3 }
0x133c   :  { %v915_v55 = vpop.permute.xlu1 %914 }
0x133d   :  { %1296 = vmatmul.mubr.msk.f32.vlgmr.msra.gmra.mrb[8].mxu1 %vm214_vm5, %v915_v55 }
0x1410   :  { %v984_v57 = vpop.f32.mrb[8].mxu1 }
0x1411   :  { %v988_v58 = vadd.f32 %v984_v57, %v211_v56  ;;  %v1297_v59 = vpop.f32.mrb[9].mxu1 }
0x1413   :  { %1425 = vtanh.f32 %v988_v58  ;;  %v1139_v61 = vmul.f32 -1.442695, %v988_v58 }
0x1415   :  { %1427 = vpow2.f32 %v1139_v61 }
0x141d   :  { %v1426_v60 = vpop.eup %1425 }
0x141e   :  { %998 = vrot.lane.b32.xlu0 %v1426_v60, %s1460_s10 }
0x141f   :  { %v1428_v62 = vpop.eup %1427 }
0x1420   :  { %v992_v63 = vadd.f32 1.0, %v1428_v62 }
0x1422   :  { %1429 = vrcp.f32 %v992_v63 }
0x142c   :  { %v1430_v0 = vpop.eup %1429 }
0x142d   :  { %v996_v7 = vmul.f32 %v1430_v0, %v906_v25 }
0x1490   :  { %v999_v1 = vpop.permute.xlu0 %998 }
0x1491   :  { %v1001_v2 = vmul.f32 %v1430_v0, %v999_v1 }
0x1493   :  { %1003 = vrot.lane.b32.xlu1 %v1001_v2, %s1460_s10 }
0x1505   :  { %v1004_v8 = vpop.permute.xlu1 %1003 }
0x1506   :  { %v1006_v17 = vadd.f32 %v1004_v8, %v996_v7 }
0x1508   :  { %1431 = vtanh.f32 %v1006_v17 }
0x1512   :  { %v1432_v15 = vpop.eup %1431 }
0x1513   :  { %1009 = vrot.lane.b32.xlu0 %v1432_v15, %s1460_s10 }
0x1585   :  { %v1010_v16 = vpop.permute.xlu0 %1009 }
0x1586   :  { %v1012_v18 = vmul.f32 %v1430_v0, %v1010_v16 }
0x1588   :  { %1025 = vrot.lane.b32.xlu1 %v1012_v18, %s1461_s3 }
0x15fa   :  { %v1026_v6 = vpop.permute.xlu1 %1025 }
0x15fb   :  { %1307 = vmatmul.mubr.msk.f32.vlgmr.msra.gmra.mrb[14].mxu0 %vm214_vm5, %v1026_v6 }
0x16ce   :  { %v1095_v20 = vpop.f32.mrb[14].mxu0 }
0x16cf   :  { %v1096_v3 = vadd.f32 %v1140_v19, %v1095_v20  ;;  %v1308_v21 = vpop.f32.mrb[15].mxu0 }
0x16d1   :  { %1100 = vst.msk [vmem:[#allocation2] sm:$0x3] %vm1099_vm6, %v1096_v3 }
0x16d2   :  { %1444 = shalt.err (!%p1441_p4)
}
0x16d3   :  { %s1445_s25 = scalar_lea.hbm %s1722_s6, 32 }
0x16d4   :  { %p1446_p5 = scmp.ne.s32.totalorder %s1722_s6, %s1445_s25  ;;  %p1449_p6 = scmp.lt.u32.totalorder %s1445_s25, %s1722_s6 }
0x16d6   :  { %p1451_p7 = pnand %p1449_p6, %p1446_p5 }
0x16d8   :  { %1454 = shalt.err (!%p1451_p7)
}
0x16d9   :  { %1110 = dma.vmem_to_hbm [thread:$0]  %s1108_s21, 32, %s1722_s6, [#allocation3]  }
0x16da   :  { %1455 = dma.done.wait [#allocation3], 32  }
0x16db   :  { %1456 = vsyncadd [#allocation3], 4294967264 }
0x16dc   :  { %1114 = vsyncpa [#allocation3], 1 }

</bundles_post_ra>
